<compile_context>
chip_gen: v7x
topology: tpu7x:2x2x1
jax: 0.10.0
libtpu: 0.0.40
codegen_flags: <defaults>
</compile_context>

<pallas_src>
import jax
import jax.numpy as jnp
from jax.experimental import pallas as pl
from jax.experimental.pallas import tpu as pltpu

EPS = 0.001                       # nn.BatchNorm2d(13, 0.001)
_VMEM_LIMIT = 48 * 1024 * 1024    # < 64 MiB (v7x physical); plenty for <20 MiB/step


def _choose_row_tile(ho, wo, target_px=32768):
    """Largest multiple-of-8 divisor of `ho` with ~target_px output pixels per tile."""
    if ho % 8 != 0:
        return ho  # whole-image rows: block dim == full array dim is always legal
    cap = max(8, min(ho, (target_px // max(wo, 1)) // 8 * 8))
    for cand in range(cap, 7, -8):
        if ho % cand == 0:
            return cand
    return 8


def _conv_taps(a0, a1):
    """The 9 im2col tap slabs, each (3, TR, Wo), in (kh, kw) row-major order.

    a0: (6, TR+1, Wo+1) even padded rows (carries the +1-row halo);
        channels 0-2 = even padded cols, 3-5 = odd padded cols.
    a1: (6, TR,   Wo+1) odd padded rows; same channel split.
    Output pixel (r, c) reads padded pixel (2r+kh, 2c+kw).
    """
    tr = a1.shape[1]
    wo = a1.shape[2] - 1
    e0 = a0[0:3, 0:tr, :]          # even rows at r,   even cols
    e1 = a0[0:3, 1:tr + 1, :]      # even rows at r+1, even cols
    f0 = a0[3:6, 0:tr, 0:wo]       # even rows at r,   odd cols (c)
    f1 = a0[3:6, 1:tr + 1, 0:wo]   # even rows at r+1, odd cols (c)
    g = a1[0:3, :, :]              # odd rows at r,    even cols
    k = a1[3:6, :, 0:wo]           # odd rows at r,    odd cols (c)
    return [
        e0[:, :, 0:wo],       # (0, 0)
        f0,                   # (0, 1)
        e0[:, :, 1:wo + 1],   # (0, 2)
        g[:, :, 0:wo],        # (1, 0)
        k,                    # (1, 1)
        g[:, :, 1:wo + 1],    # (1, 2)
        e1[:, :, 0:wo],       # (2, 0)
        f1,                   # (2, 1)
        e1[:, :, 1:wo + 1],   # (2, 2)
    ]


# ---------------------------------------------------------------------------
# Pass 1: per-image, per-channel sum / sum-of-squares of the bias-free conv.
# Grid (N, T); accumulators revisited along the inner ("arbitrary") tile axis.
# ---------------------------------------------------------------------------
def _stats_kernel(a0_ref, a1_ref, w_ref, sum_ref, sq_ref):
    @pl.when(pl.program_id(1) == 0)
    def _init():
        sum_ref[...] = jnp.zeros_like(sum_ref)
        sq_ref[...] = jnp.zeros_like(sq_ref)

    taps = _conv_taps(a0_ref[0, :, 0, :, :], a1_ref[0])
    tr, wo = taps[0].shape[1], taps[0].shape[2]
    patch = jnp.concatenate(taps, axis=0).reshape(27, tr * wo)          # (27, M)
    conv = jnp.dot(w_ref[...], patch, preferred_element_type=jnp.float32)  # (16, M)
    sum_ref[0] += jnp.sum(conv, axis=1, keepdims=True)                  # (16, 1)
    sq_ref[0] += jnp.sum(conv * conv, axis=1, keepdims=True)            # (16, 1)


# ---------------------------------------------------------------------------
# Pass 2: conv (BN scale folded into the weights) + shift + PReLU, maxpool from
# the same taps, stored as a lane-dense (1, 16, TR, Wo) NCHW block.
# ---------------------------------------------------------------------------
def _apply_kernel(a0_ref, a1_ref, w_ref, shift_ref, alpha_ref, out_ref):
    taps = _conv_taps(a0_ref[0, :, 0, :, :], a1_ref[0])
    tr, wo = taps[0].shape[1], taps[0].shape[2]
    patch = jnp.concatenate(taps, axis=0).reshape(27, tr * wo)          # (27, M)

    y = jnp.dot(w_ref[...], patch, preferred_element_type=jnp.float32)  # (16, M)
    y = y + shift_ref[...]                                              # BN shift
    y = jnp.where(y >= 0, y, alpha_ref[...] * y)                        # PReLU
    y = y.reshape(16, tr, wo)

    # MaxPool2d(2, stride=2) of the raw input == max over taps (kh,kw) in {1,2}^2
    pool = jnp.maximum(jnp.maximum(taps[4], taps[5]),
                       jnp.maximum(taps[7], taps[8]))                   # (3, TR, Wo)

    out_ref[0, 0:13] = y[0:13]
    out_ref[0, 13:16] = pool.astype(out_ref.dtype)


def initial_block(x, params, *, target_tile_px=32768, compute_dtype=jnp.float32):
    """x: (N, 3, H, W) float32 NCHW. Returns (N, 16, H//2, W//2) float32 NCHW.

    `compute_dtype=jnp.bfloat16` halves the phase-tensor HBM traffic (MXU still
    accumulates in f32); the default keeps everything exact in f32.
    """
    N, C, H, W = x.shape
    assert C == 3 and H % 2 == 0 and W % 2 == 0
    Ho, Wo = H // 2, W // 2
    f32 = jnp.float32
    cdt = jnp.dtype(compute_dtype)

    w, b, gamma, beta, alpha = params   # conv bias `b` cancels exactly vs. BN batch mean
    del b

    TR = _choose_row_tile(Ho, Wo, target_tile_px)
    T = Ho // TR
    grid = (N, T)

    # --- glue: pad + space-to-depth phase split (one fused XLA pass over x) ---
    xp = jnp.pad(x.astype(cdt), ((0, 0), (0, 0), (1, 1), (1, 1)))       # (N,3,H+2,W+2)
    even_rows = xp[:, :, 0::2, :]                      # padded rows 0,2,..,H   (Ho+1)
    odd_rows = xp[:, :, 1::2, :][:, :, :Ho, :]         # padded rows 1,3,..,H-1 (Ho)

    def col_split(a):   # (N,3,R,W+2) -> (N,6,R,Wo+1): ch 0-2 even cols, 3-5 odd cols
        return jnp.concatenate([a[..., 0::2], a[..., 1::2]], axis=1)

    arr0 = col_split(even_rows)                        # (N, 6, Ho+1, Wo+1)
    arr1 = col_split(odd_rows)                         # (N, 6, Ho,   Wo+1)

    # Duplicate the single halo row per tile so each grid step is a
    # self-contained, non-overlapping block (≈1/TR extra bytes).
    ridx = jnp.arange(T)[:, None] * TR + jnp.arange(TR + 1)[None, :]    # (T, TR+1)
    arr0g = arr0[:, :, ridx, :]                        # (N, 6, T, TR+1, Wo+1)

    # Conv weight as (16, 27): row = kh*9 + kw*3 + cin; 3 zero rows pad cout.
    w_mat = jnp.transpose(w.astype(f32), (0, 2, 3, 1)).reshape(13, 27)
    w16 = jnp.zeros((16, 27), f32).at[:13].set(w_mat)

    a0_spec = pl.BlockSpec((1, 6, 1, TR + 1, Wo + 1), lambda n, t: (n, 0, t, 0, 0))
    a1_spec = pl.BlockSpec((1, 6, TR, Wo + 1), lambda n, t: (n, 0, t, 0))
    w_spec = pl.BlockSpec((16, 27), lambda n, t: (0, 0))
    vec_spec = pl.BlockSpec((16, 1), lambda n, t: (0, 0))
    stat_spec = pl.BlockSpec((1, 16, 1), lambda n, t: (n, 0, 0))

    # ---------------- pass 1: BN batch statistics -----------------------------
    conv_sum, conv_sq = pl.pallas_call(
        _stats_kernel,
        out_shape=(jax.ShapeDtypeStruct((N, 16, 1), f32),
                   jax.ShapeDtypeStruct((N, 16, 1), f32)),
        grid=grid,
        in_specs=[a0_spec, a1_spec, w_spec],
        out_specs=(stat_spec, stat_spec),
        compiler_params=pltpu.CompilerParams(
            dimension_semantics=("parallel", "arbitrary"),
            vmem_limit_bytes=_VMEM_LIMIT),
    )(arr0g, arr1, w16.astype(cdt))

    # Tiny per-channel math (13 values): fold BN into a weight scale + shift.
    m_real = N * Ho * Wo
    csum = jnp.sum(conv_sum[:, :13, 0], axis=0)        # (13,)
    csq = jnp.sum(conv_sq[:, :13, 0], axis=0)
    mean_c = csum / m_real                             # E[conv] (bias-free)
    var = csq / m_real - mean_c * mean_c               # biased var (training-mode BN)
    scale = gamma.astype(f32) * jax.lax.rsqrt(var + EPS)
    shift = beta.astype(f32) - mean_c * scale          # conv bias cancels exactly

    scale16 = jnp.zeros((16, 1), f32).at[:13, 0].set(scale)
    shift16 = jnp.zeros((16, 1), f32).at[:13, 0].set(shift)
    alpha16 = jnp.ones((16, 1), f32).at[:13, 0].set(alpha.astype(f32))
    w16_scaled = (w16 * scale16).astype(cdt)

    # ---------------- pass 2: normalize + PReLU + pool + store ----------------
    out = pl.pallas_call(
        _apply_kernel,
        out_shape=jax.ShapeDtypeStruct((N, 16, Ho, Wo), f32),
        grid=grid,
        in_specs=[a0_spec, a1_spec, w_spec, vec_spec, vec_spec],
        out_specs=pl.BlockSpec((1, 16, TR, Wo), lambda n, t: (n, 0, t, 0)),
        compiler_params=pltpu.CompilerParams(
            dimension_semantics=("parallel", "parallel"),
            vmem_limit_bytes=_VMEM_LIMIT),
    )(arr0g, arr1, w16_scaled, shift16, alpha16)

    return out   # already NCHW (N, 16, Ho, Wo); no slice / reshape / transpose


def _reference(x, params):
    """Pure-JAX reference of the PyTorch module (training-mode BatchNorm)."""
    w, b, gamma, beta, alpha = params
    conv = jax.lax.conv_general_dilated(
        x, w, window_strides=(2, 2), padding=((1, 1), (1, 1)),
        dimension_numbers=("NCHW", "OIHW", "NCHW"),
        precision=jax.lax.Precision.HIGHEST)
    conv = conv + b[None, :, None, None]
    mean = jnp.mean(conv, axis=(0, 2, 3), keepdims=True)
    var = jnp.mean((conv - mean) ** 2, axis=(0, 2, 3), keepdims=True)
    y = (conv - mean) * jax.lax.rsqrt(var + EPS)
    y = y * gamma[None, :, None, None] + beta[None, :, None, None]
    y = jnp.where(y >= 0, y, alpha[None, :, None, None] * y)
    n, c, h, w_ = x.shape
    pool = x.reshape(n, c, h // 2, 2, w_ // 2, 2).max(axis=(3, 5))
    return jnp.concatenate([y, pool], axis=1)


if __name__ == "__main__":
    key = jax.random.PRNGKey(0)
    kx, kw, kb, kg, kbe = jax.random.split(key, 5)

    N, C, H, W = 2, 3, 16, 16
    x = jax.random.normal(kx, (N, C, H, W), dtype=jnp.float32)

    # deterministic synthetic parameters (shapes from the module's __init__)
    w = 0.1 * jax.random.normal(kw, (13, 3, 3, 3), dtype=jnp.float32)    # Conv2d weight
    b = 0.1 * jax.random.normal(kb, (13,), dtype=jnp.float32)            # Conv2d bias
    gamma = 1.0 + 0.1 * jax.random.normal(kg, (13,), dtype=jnp.float32)  # BN weight
    beta = 0.1 * jax.random.normal(kbe, (13,), dtype=jnp.float32)        # BN bias
    alpha = jnp.full((13,), 0.25, dtype=jnp.float32)                     # PReLU default

    params = (w, b, gamma, beta, alpha)
    out = jax.block_until_ready(initial_block(x, params))

    assert out.shape == (N, 16, H // 2, W // 2), out.shape
    assert bool(jnp.all(jnp.isfinite(out)))

    # Loose tolerance absorbs MXU / XLA-conv precision differences while still
    # catching structural bugs (tap ordering, halo rows, BN fold), which are O(1).
    ref = _reference(x, params)
    max_err = float(jnp.max(jnp.abs(out - ref)))
    assert max_err < 1e-1, f"max |err| = {max_err}"

    print("KERNEL_OK")
</pallas_src>

<mosaic_0001>
module attributes {stable_mosaic.version = 11 : i64} {
  func.func @_stats_kernel(%arg0: i32, %arg1: i32, %arg2: memref<1x6x1x9x9xf32, #tpu.memory_space<vmem>>, %arg3: memref<1x6x8x9xf32, #tpu.memory_space<vmem>>, %arg4: memref<16x27xf32, #tpu.memory_space<vmem>>, %arg5: memref<1x16x1xf32, #tpu.memory_space<vmem>>, %arg6: memref<1x16x1xf32, #tpu.memory_space<vmem>>) attributes {dimension_semantics = [#tpu.dimension_semantics<parallel>, #tpu.dimension_semantics<arbitrary>], iteration_bounds = array<i64: 2, 1>, scalar_prefetch = 0 : i64, scratch_operands = 0 : i64, tpu.core_type = #tpu.core_type<tc>, window_params = [{transform_indices = @transform_0, window_bounds = array<i64: 1, 6, 1, 9, 9>}, {transform_indices = @transform_1, window_bounds = array<i64: 1, 6, 8, 9>}, {pipeline_mode = #tpu.pipeline_mode<synchronous>, transform_indices = @transform_2, window_bounds = array<i64: 16, 27>}, {transform_indices = @transform_3, window_bounds = array<i64: 1, 16, 1>}, {transform_indices = @transform_4, window_bounds = array<i64: 1, 16, 1>}]} {
    %c0_i32 = arith.constant 0 : i32
    %0 = arith.cmpi eq, %arg1, %c0_i32 : i32
    %1 = arith.extui %0 : i1 to i32
    %c0_i32_0 = arith.constant 0 : i32
    %2 = arith.cmpi ne, %1, %c0_i32_0 : i32
    scf.if %2 {
      %cst_25 = arith.constant 0.000000e+00 : f32
      %40 = vector.broadcast %cst_25 : f32 to vector<1x16x1xf32>
      %c0_26 = arith.constant 0 : index
      %c0_27 = arith.constant 0 : index
      %c0_28 = arith.constant 0 : index
      %41 = vector.load %arg5[%c0_26, %c0_27, %c0_28] : memref<1x16x1xf32, #tpu.memory_space<vmem>>, vector<1x16x1xf32>
      tpu.vector_store %arg5[%c0_26, %c0_27, %c0_28], %40 {strides = array<i32>} : memref<1x16x1xf32, #tpu.memory_space<vmem>>, vector<1x16x1xf32>,
      %cst_29 = arith.constant 0.000000e+00 : f32
      %42 = vector.broadcast %cst_29 : f32 to vector<1x16x1xf32>
      %c0_30 = arith.constant 0 : index
      %c0_31 = arith.constant 0 : index
      %c0_32 = arith.constant 0 : index
      %43 = vector.load %arg6[%c0_30, %c0_31, %c0_32] : memref<1x16x1xf32, #tpu.memory_space<vmem>>, vector<1x16x1xf32>
      tpu.vector_store %arg6[%c0_30, %c0_31, %c0_32], %42 {strides = array<i32>} : memref<1x16x1xf32, #tpu.memory_space<vmem>>, vector<1x16x1xf32>,
    } else {
    }
    %c0 = arith.constant 0 : index
    %c0_1 = arith.constant 0 : index
    %c0_2 = arith.constant 0 : index
    %c0_3 = arith.constant 0 : index
    %c0_4 = arith.constant 0 : index
    %3 = vector.load %arg2[%c0, %c0_1, %c0_2, %c0_3, %c0_4] : memref<1x6x1x9x9xf32, #tpu.memory_space<vmem>>, vector<1x6x1x9x9xf32>
    %4 = vector.shape_cast %3 : vector<1x6x1x9x9xf32> to vector<6x9x9xf32>
    %c0_5 = arith.constant 0 : index
    %c0_6 = arith.constant 0 : index
    %c0_7 = arith.constant 0 : index
    %c0_8 = arith.constant 0 : index
    %5 = vector.load %arg3[%c0_5, %c0_6, %c0_7, %c0_8] : memref<1x6x8x9xf32, #tpu.memory_space<vmem>>, vector<1x6x8x9xf32>
    %6 = vector.shape_cast %5 : vector<1x6x8x9xf32> to vector<6x8x9xf32>
    %7 = vector.extract_strided_slice %4 {offsets = [0, 0, 0], sizes = [3, 8, 9], strides = [1, 1, 1]} : vector<6x9x9xf32> to vector<3x8x9xf32>
    %8 = vector.extract_strided_slice %4 {offsets = [0, 1, 0], sizes = [3, 8, 9], strides = [1, 1, 1]} : vector<6x9x9xf32> to vector<3x8x9xf32>
    %9 = vector.extract_strided_slice %4 {offsets = [3, 0, 0], sizes = [3, 8, 8], strides = [1, 1, 1]} : vector<6x9x9xf32> to vector<3x8x8xf32>
    %10 = vector.extract_strided_slice %4 {offsets = [3, 1, 0], sizes = [3, 8, 8], strides = [1, 1, 1]} : vector<6x9x9xf32> to vector<3x8x8xf32>
    %11 = vector.extract_strided_slice %6 {offsets = [0, 0, 0], sizes = [3, 8, 9], strides = [1, 1, 1]} : vector<6x8x9xf32> to vector<3x8x9xf32>
    %12 = vector.extract_strided_slice %6 {offsets = [3, 0, 0], sizes = [3, 8, 8], strides = [1, 1, 1]} : vector<6x8x9xf32> to vector<3x8x8xf32>
    %13 = vector.extract_strided_slice %7 {offsets = [0, 0, 0], sizes = [3, 8, 8], strides = [1, 1, 1]} : vector<3x8x9xf32> to vector<3x8x8xf32>
    %14 = vector.extract_strided_slice %7 {offsets = [0, 0, 1], sizes = [3, 8, 8], strides = [1, 1, 1]} : vector<3x8x9xf32> to vector<3x8x8xf32>
    %15 = vector.extract_strided_slice %11 {offsets = [0, 0, 0], sizes = [3, 8, 8], strides = [1, 1, 1]} : vector<3x8x9xf32> to vector<3x8x8xf32>
    %16 = vector.extract_strided_slice %11 {offsets = [0, 0, 1], sizes = [3, 8, 8], strides = [1, 1, 1]} : vector<3x8x9xf32> to vector<3x8x8xf32>
    %17 = vector.extract_strided_slice %8 {offsets = [0, 0, 0], sizes = [3, 8, 8], strides = [1, 1, 1]} : vector<3x8x9xf32> to vector<3x8x8xf32>
    %18 = vector.extract_strided_slice %8 {offsets = [0, 0, 1], sizes = [3, 8, 8], strides = [1, 1, 1]} : vector<3x8x9xf32> to vector<3x8x8xf32>
    %19 = tpu.concatenate %13, %9, %14, %15, %12, %16, %17, %10, %18 in 0 : vector<3x8x8xf32>, vector<3x8x8xf32>, vector<3x8x8xf32>, vector<3x8x8xf32>, vector<3x8x8xf32>, vector<3x8x8xf32>, vector<3x8x8xf32>, vector<3x8x8xf32>, vector<3x8x8xf32> -> vector<27x8x8xf32>
    %20 = vector.shape_cast %19 : vector<27x8x8xf32> to vector<27x64xf32>
    %c0_9 = arith.constant 0 : index
    %c0_10 = arith.constant 0 : index
    %21 = vector.load %arg4[%c0_9, %c0_10] : memref<16x27xf32, #tpu.memory_space<vmem>>, vector<16x27xf32>
    %cst = arith.constant dense<0.000000e+00> : vector<16x64xf32>
    %22 = tpu.matmul %21, %20, %cst {dimension_numbers = #tpu.dot_dimension_numbers<[1], [0], [0], [1], [0, 0, 1, 1], [], []>} : vector<16x27xf32>, vector<27x64xf32>, vector<16x64xf32> -> vector<16x64xf32>
    %c0_11 = arith.constant 0 : index
    %c0_12 = arith.constant 0 : index
    %c0_13 = arith.constant 0 : index
    %23 = vector.load %arg5[%c0_11, %c0_12, %c0_13] : memref<1x16x1xf32, #tpu.memory_space<vmem>>, vector<1x16x1xf32>
    %24 = vector.shape_cast %23 : vector<1x16x1xf32> to vector<16x1xf32>
    %cst_14 = arith.constant dense<0.000000e+00> : vector<16xf32>
    %25 = vector.multi_reduction <add>, %22, %cst_14 [1] : vector<16x64xf32> to vector<16xf32>
    %26 = vector.shape_cast %25 : vector<16xf32> to vector<16x1xf32>
    %27 = arith.addf %24, %26 : vector<16x1xf32>
    %c0_15 = arith.constant 0 : index
    %c0_16 = arith.constant 0 : index
    %c0_17 = arith.constant 0 : index
    %28 = vector.load %arg5[%c0_15, %c0_16, %c0_17] : memref<1x16x1xf32, #tpu.memory_space<vmem>>, vector<1x16x1xf32>
    %29 = vector.shape_cast %28 : vector<1x16x1xf32> to vector<16x1xf32>
    %30 = vector.shape_cast %27 : vector<16x1xf32> to vector<1x16x1xf32>
    tpu.vector_store %arg5[%c0_15, %c0_16, %c0_17], %30 {strides = array<i32>} : memref<1x16x1xf32, #tpu.memory_space<vmem>>, vector<1x16x1xf32>,
    %c0_18 = arith.constant 0 : index
    %c0_19 = arith.constant 0 : index
    %c0_20 = arith.constant 0 : index
    %31 = vector.load %arg6[%c0_18, %c0_19, %c0_20] : memref<1x16x1xf32, #tpu.memory_space<vmem>>, vector<1x16x1xf32>
    %32 = vector.shape_cast %31 : vector<1x16x1xf32> to vector<16x1xf32>
    %33 = arith.mulf %22, %22 : vector<16x64xf32>
    %cst_21 = arith.constant dense<0.000000e+00> : vector<16xf32>
    %34 = vector.multi_reduction <add>, %33, %cst_21 [1] : vector<16x64xf32> to vector<16xf32>
    %35 = vector.shape_cast %34 : vector<16xf32> to vector<16x1xf32>
    %36 = arith.addf %32, %35 : vector<16x1xf32>
    %c0_22 = arith.constant 0 : index
    %c0_23 = arith.constant 0 : index
    %c0_24 = arith.constant 0 : index
    %37 = vector.load %arg6[%c0_22, %c0_23, %c0_24] : memref<1x16x1xf32, #tpu.memory_space<vmem>>, vector<1x16x1xf32>
    %38 = vector.shape_cast %37 : vector<1x16x1xf32> to vector<16x1xf32>
    %39 = vector.shape_cast %36 : vector<16x1xf32> to vector<1x16x1xf32>
    tpu.vector_store %arg6[%c0_22, %c0_23, %c0_24], %39 {strides = array<i32>} : memref<1x16x1xf32, #tpu.memory_space<vmem>>, vector<1x16x1xf32>,
    return
  }
  func.func @transform_0(%arg0: i32, %arg1: i32) -> (i32, i32, i32, i32, i32) {
    %c0_i32 = arith.constant 0 : i32
    %c0_i32_0 = arith.constant 0 : i32
    %c0_i32_1 = arith.constant 0 : i32
    %c0_i32_2 = arith.constant 0 : i32
    return %arg0, %c0_i32, %arg1, %c0_i32_0, %c0_i32_1 : i32, i32, i32, i32, i32
  }
  func.func @transform_1(%arg0: i32, %arg1: i32) -> (i32, i32, i32, i32) {
    %c0_i32 = arith.constant 0 : i32
    %c0_i32_0 = arith.constant 0 : i32
    %c0_i32_1 = arith.constant 0 : i32
    return %arg0, %c0_i32, %arg1, %c0_i32_0 : i32, i32, i32, i32
  }
  func.func @transform_2(%arg0: i32, %arg1: i32) -> (i32, i32) {
    %c0_i32 = arith.constant 0 : i32
    %c0_i32_0 = arith.constant 0 : i32
    %c0_i32_1 = arith.constant 0 : i32
    return %c0_i32, %c0_i32_0 : i32, i32
  }
  func.func @transform_3(%arg0: i32, %arg1: i32) -> (i32, i32, i32) {
    %c0_i32 = arith.constant 0 : i32
    %c0_i32_0 = arith.constant 0 : i32
    %c0_i32_1 = arith.constant 0 : i32
    return %arg0, %c0_i32, %c0_i32_0 : i32, i32, i32
  }
  func.func @transform_4(%arg0: i32, %arg1: i32) -> (i32, i32, i32) {
    %c0_i32 = arith.constant 0 : i32
    %c0_i32_0 = arith.constant 0 : i32
    %c0_i32_1 = arith.constant 0 : i32
    return %arg0, %c0_i32, %c0_i32_0 : i32, i32, i32
  }
}

</mosaic_0001>

<bundles_post_ra>
// kernel: tpu_custom_call.1
= control target key start
LH: loop header
LB: loop body
LE: loop exit
PB: predicated region body
PF: predicated region fallthrough
CT: control target
= control target key end

     0   :  { %s1442_s15 = smov 0   ;;  %s1444_s16 = smov 0   ;;  %s1780_s0 = inlined_call_operand.vmem [shape: f32[2,6,1,9,9], index: 0, kind: input, shape index: {}]   ;;  %s1781_s1 = inlined_call_operand.vmem [shape: f32[2,6,8,9], index: 1, kind: input, shape index: {}]   ;;  %s1782_s2 = inlined_call_operand.vmem [shape: f32[16,27], index: 2, kind: input, shape index: {}]   ;;  %s1783_s3 = inlined_call_operand.vmem [shape: f32[2,16,1], index: 3, kind: output, shape index: {0}]   ;;  %s1784_s4 = inlined_call_operand.vmem [shape: f32[2,16,1], index: 4, kind: output, shape index: {1}]  }
   0x1   :  { %s1446_s17 = smov 0  }
   0x2 LB: > { %s27_s18 = sadd.s32 1, %s1399_s16  ;;  %p1227_p0 = scmp.ge.s32.totalorder %s1403_s17, 1  ;;  %s1403_s17 = sphi %s1446_s17, %s15_s17   ;;  %s1399_s16 = sphi %s1444_s16, %s1786_s16   ;;  %s1395_s15 = sphi %s1442_s15, %s1785_s15  }
   0x3   : > { %p29_p1 = scmp.ge.s32.totalorder %s27_s18, 2  ;;  %p198_p2 = scmp.lt.s32.totalorder %s1403_s17, 3 }
   0x5   : > { %s1788_s18 = smov (%p29_p1, %s27_s18), 0  ;;  %p199_p3 = pnand %p1227_p0, %p198_p2 }
   0x6   : > { %p241_p4 = scmp.lt.s32.totalorder (!%p199_p3), %s1395_s15, 1  ;;  %v367_v0 = vlaneseq (!%p199_p3)  ;;  %v1405_v1 = vmov (!%p199_p3), 1983009808   ;;  %s1406_s27 = smov (!%p199_p3), 127   ;;  %vm322_vm0 = vcmask (!%p199_p3), 1046528   ;;  %vm986_vm1 = vcmask (!%p199_p3), 220160  }
   0x7   : > { %202 = sbr.rel (%p199_p3) target bundleno = 667 (0x29b), region = 32  ;;  %v365_v2 = vunpack.c.l.s4 (!%p199_p3), %v1405_v1  ;;  %v1407_v1 = vmov (!%p199_p3), 1934713408   ;;  %s1409_s28 = smov (!%p199_p3), 8   ;;  %vm949_vm2 = vcmask (!%p199_p3), 64512   ;;  %vm954_vm3 = vcmask (!%p199_p3), 130048  }
   0x8   : > { %v1463_v4 = vshrl.u32 (!%p199_p3), %v367_v0, 7  ;;  %s1410_s29 = smov (!%p199_p3), 16   ;;  %s1411_s30 = smov (!%p199_p3), 24   ;;  %vm959_vm4 = vcmask (!%p199_p3), 195584   ;;  %vm964_vm5 = vcmask (!%p199_p3), 261120   ;;  %vm969_vm6 = vcmask (!%p199_p3), 326656  }
   0x9   : > { %v366_v3 = vunpack.c.0.s8 (!%p199_p3), %v365_v2  ;;  %v429_v2 = vunpack.c.l.s4 (!%p199_p3), %v1407_v1  ;;  %s1412_s5 = smov (!%p199_p3), 32   ;;  %s1413_s6 = smov (!%p199_p3), 40   ;;  %vm974_vm7 = vcmask (!%p199_p3), 392192   ;;  %vm979_vm8 = vcmask (!%p199_p3), 457728  }
   0xa   : > { %s1414_s7 = smov (!%p199_p3), 48   ;;  %s1415_s8 = smov (!%p199_p3), 56   ;;  %vm993_vm9 = vcmask (!%p199_p3), 1042432   ;;  %vm1416_vm10 = vmmov (!%p199_p3), 1   ;;  %vm272_vm12 = vcmask (!%p199_p3), 7168   ;;  %vm1074_vm13 = vcmask (!%p199_p3), 523264  }
   0xb   : > { %v1480_v7 = vsub.s32 (!%p199_p3), %v366_v3, %v1463_v4  ;;  %v430_v3 = vunpack.c.0.s8 (!%p199_p3), %v429_v2  ;;  %vm1263_vm11 = vmpackc.low (!%p199_p3), %vm993_vm9, %vm1416_vm10 }
   0xe   : > { %s1790_s15 = smov (!%p241_p4, %s1395_s15), 1 }
   0xf   : > { %s1268_s19 = smul.u32 96, %s1790_s15  ;;  %s1239_s13 = sshll.u32 %s1790_s15, 4 }
  0x10   : > { %s1269_s20 = smul.u32 48, %s1790_s15  ;;  %s267_s22 = scalar_lea.vmem %s1784_s4, %s1239_s13 }
  0x11   : > { %s1469_s23 = scalar_lea.vmem %s1780_s0, %s1268_s19 }
  0x12   : > { %v281_v5 = vld [vmem:[%s1469_s23 + $0x20] sm:$0xff]  ;;  %s1476_s26 = scalar_lea.vmem %s1781_s1, %s1269_s20  ;;  %v279_v10 = vld [vmem:[%s1469_s23 + $0x10] sm:$0xff]  ;;  %v282_v16 = vld [vmem:[%s1469_s23 + $0x28] sm:$0x1]  ;;  %s262_s20 = scalar_lea.vmem %s1783_s3, %s1239_s13 }
  0x13   : > { %v277_v6 = vld [vmem:[%s1469_s23] sm:$0xff]  ;;  %302 = vrot.lane.b32.xlu1 %v281_v5, %s1406_s27  ;;  %v283_v11 = vld [vmem:[%s1469_s23 + $0x30] sm:$0xff]  ;;  %v286_v21 = vld [vmem:[%s1469_s23 + $0x48] sm:$0x1]  ;;  %v329_v22 = vrot.slane %v281_v5, 1  ;;  %v330_v25 = vrot.slane %v282_v16, 1  ;;  %v1569_v16 = vsub.s32 %v430_v3, %v1463_v4 }
  0x14   : > { %298 = vrot.lane.b32.xlu0 %v277_v6, %s1406_s27  ;;  %v362_v8 = vcombine.low %v277_v6, %v281_v5  ;;  %v363_v9 = vcombine.high %v277_v6, %v281_v5  ;;  %v1486_v12 = vld [vmem:[%s1476_s26] sm:$0xff]  ;;  %v378_v13 = vcombine.low %v279_v10, %v283_v11  ;;  %v379_v14 = vcombine.high %v279_v10, %v283_v11  ;;  %v1489_v15 = vld [vmem:[%s1476_s26 + $0x10] sm:$0xff]  ;;  %v278_v23 = vld [vmem:[%s1469_s23 + $0x8] sm:$0x1] }
  0x15   : > { %v514_v18 = vcombine.low %v1486_v12, %v1489_v15  ;;  %v515_v19 = vcombine.high %v1486_v12, %v1489_v15  ;;  %v1500_v20 = vld [vmem:[%s1469_s23 + $0x40] sm:$0xff]  ;;  %v341_v27 = vrot.slane %v283_v11, 1  ;;  %v345_v28 = vrot.slane %v286_v21, 1  ;;  %v290_v31 = vld [vmem:[%s1476_s26 + $0x8] sm:$0xff]  ;;  %v284_v33 = vld [vmem:[%s1469_s23 + $0x38] sm:$0x1] }
  0x16   : > { %v1493_v17 = vrot.slane %v362_v8, %v1480_v7  ;;  %v1505_v24 = vrot.slane %v378_v13, %v1480_v7  ;;  %v344_v26 = vrot.slane %v1500_v20, 1  ;;  %v323_v29 = vrot.slane %v277_v6, 1  ;;  %v1517_v34 = vld [vmem:[%s1469_s23 + $0x50] sm:$0xff]  ;;  %v280_v40 = vld [vmem:[%s1469_s23 + $0x18] sm:$0x1] }
  0x17   : > { %310 = vrot.lane.b32.xlu1 %v1486_v12, %s1406_s27  ;;  %v1512_v30 = vrot.slane %v363_v9, %v1480_v7  ;;  %v324_v32 = vrot.slane %v278_v23, 1  ;;  %v393_v37 = vrot.slane %v379_v14, %v1480_v7  ;;  %v331_v38 = vsel %vm322_vm0, %v329_v22, %v330_v25  ;;  %v288_v41 = vld [vmem:[%s1469_s23 + $0x58] sm:$0x1]  ;;  %v1380_v6 = vld [vmem:[%s1476_s26 + $0x1c] ss:$16 sps:$4 sm:$0xff]   ;;  %v293_v23 = vld [vmem:[%s1476_s26 + $0x20] sm:$0xff] }
  0x18   : > { %300 = vrot.lane.b32.xlu0 %v279_v10, %s1406_s27  ;;  %v426_v35 = vcombine.low %v1493_v17, %v1505_v24  ;;  %v427_v36 = vcombine.high %v1493_v17, %v1505_v24  ;;  %v346_v39 = vsel %vm322_vm0, %v344_v26, %v345_v28  ;;  %v342_v42 = vrot.slane %v284_v33, 1  ;;  %v1378_v5 = vld [vmem:[%s1476_s26 + $0x18] ss:$16 sps:$4 sm:$0xff]  }
  0x19   : > { %v666_v43 = vcombine.low %v331_v38, %v346_v39  ;;  %v667_v44 = vcombine.high %v331_v38, %v346_v39  ;;  %v347_v46 = vrot.slane %v1517_v34, 1  ;;  %v348_v47 = vrot.slane %v288_v41, 1 }
  0x1a   : > { %v343_v45 = vsel %vm322_vm0, %v341_v27, %v342_v42  ;;  %v1534_v48 = vsel %vm322_vm0, %v323_v29, %v324_v32  ;;  %v326_v49 = vrot.slane %v279_v10, 1  ;;  %v327_v50 = vrot.slane %v280_v40, 1 }
  0x1b   : > { %314 = vrot.lane.b32.xlu1 %v1489_v15, %s1406_s27  ;;  %v349_v51 = vsel %vm322_vm0, %v347_v46, %v348_v47  ;;  %v442_v52 = vcombine.low %v1512_v30, %v393_v37  ;;  %v443_v53 = vcombine.high %v1512_v30, %v393_v37  ;;  %v674_v54 = vrot.slane %v666_v43, %v1480_v7 }
  0x1c   : > { %312 = vrot.lane.b32.xlu0 %v290_v31, %s1406_s27  ;;  %v1541_v55 = vrot.slane %v667_v44, %v1480_v7  ;;  %v682_v56 = vcombine.low %v343_v45, %v349_v51  ;;  %v683_v57 = vcombine.high %v343_v45, %v349_v51  ;;  %v1547_v58 = vsel %vm322_vm0, %v326_v49, %v327_v50 }
  0x1d   : > { %v522_v10 = vrot.slane %v514_v18, %v1480_v7  ;;  %v1566_v14 = vrot.slane %v515_v19, %v1480_v7  ;;  %v538_v17 = vrot.slane %v1378_v5, %v1480_v7  ;;  %v545_v24 = vrot.slane %v1380_v6, %v1480_v7 }
  0x1e   : > { %v690_v59 = vrot.slane %v682_v56, %v1480_v7  ;;  %v1551_v60 = vrot.slane %v683_v57, %v1480_v7  ;;  %v1581_v19 = vrot.slane %v426_v35, %v1569_v16  ;;  %v1584_v4 = vrot.slane %v427_v36, %v1569_v16 }
  0x1f   : > { %357 = vrot.lane.b32.xlu1 %v331_v38, %s1406_s27  ;;  %v1587_v28 = vrot.slane %v442_v52, %v1569_v16  ;;  %v1590_v29 = vrot.slane %v443_v53, %v1569_v16 }
  0x20   : > { %353 = vrot.lane.b32.xlu0 %v1534_v48, %s1406_s27  ;;  %v731_v61 = vcombine.high %v674_v54, %v690_v59  ;;  %v746_v62 = vcombine.low %v1541_v55, %v1551_v60  ;;  %v730_v63 = vcombine.low %v674_v54, %v690_v59  ;;  %v747_v0 = vcombine.high %v1541_v55, %v1551_v60 }
  0x22   : > { %v1598_v36 = vrot.slane %v731_v61, %v1569_v16  ;;  %v1601_v37 = vrot.slane %v730_v63, %v1569_v16 }
  0x24   : > { %355 = vrot.lane.b32.xlu0 %v1547_v58, %s1406_s27 }
  0x85   : > { %v303_v8 = vpop.permute.xlu1 %302 }
  0x86   : > { %v299_v9 = vpop.permute.xlu0 %298  ;;  %v498_v11 = vcombine.low %v303_v8, %v290_v31  ;;  %v499_v13 = vcombine.high %v303_v8, %v290_v31 }
  0x87   : > { %v394_v18 = vcombine.low %v1500_v20, %v299_v9  ;;  %v395_v25 = vcombine.high %v1500_v20, %v299_v9 }
  0x88   : > { %v506_v21 = vrot.slane %v498_v11, %v1480_v7  ;;  %v1574_v22 = vrot.slane %v499_v13, %v1480_v7 }
  0x89   : > { %v311_v12 = vpop.permute.xlu1 %310  ;;  %v402_v35 = vrot.slane %v394_v18, %v1480_v7  ;;  %v409_v38 = vrot.slane %v395_v25, %v1480_v7 }
  0x8a   : > { %v301_v15 = vpop.permute.xlu0 %300  ;;  %v562_v26 = vcombine.low %v506_v21, %v522_v10  ;;  %v563_v27 = vcombine.high %v506_v21, %v522_v10  ;;  %v546_v30 = vcombine.low %v293_v23, %v311_v12  ;;  %v547_v31 = vcombine.high %v293_v23, %v311_v12 }
  0x8b   : > { %v410_v20 = vcombine.low %v1517_v34, %v301_v15  ;;  %v411_v32 = vcombine.high %v1517_v34, %v301_v15  ;;  %v578_v33 = vcombine.low %v1574_v22, %v1566_v14  ;;  %v579_v45 = vcombine.high %v1574_v22, %v1566_v14 }
  0x8c   : > { %v554_v39 = vrot.slane %v546_v30, %v1480_v7  ;;  %v561_v40 = vrot.slane %v547_v31, %v1480_v7  ;;  %v1608_v43 = vrot.slane %v562_v26, %v1569_v16  ;;  %v1611_v44 = vrot.slane %v563_v27, %v1569_v16 }
  0x8d   : > { %v418_v41 = vrot.slane %v410_v20, %v1480_v7  ;;  %v315_v34 = vpop.permute.xlu1 %314  ;;  %v425_v46 = vrot.slane %v411_v32, %v1480_v7  ;;  %v1620_v52 = vrot.slane %v578_v33, %v1569_v16  ;;  %v1408_v31 = vmov 0.0  }
  0x8e   : > { %v313_v42 = vpop.permute.xlu0 %312  ;;  %v594_v47 = vcombine.low %v538_v17, %v554_v39  ;;  %v650_v49 = vcombine.low %v315_v34, %v1547_v58  ;;  %v651_v50 = vcombine.high %v315_v34, %v1547_v58  ;;  %v595_v57 = vcombine.high %v538_v17, %v554_v39  ;;  %274 = vst.msk [vmem:[%s262_s20 + $0x8] sm:$0xff] %vm272_vm12, %v1408_v31 }
  0x8f   : > { %v634_v51 = vcombine.low %v313_v42, %v1534_v48  ;;  %v458_v53 = vcombine.low %v402_v35, %v418_v41  ;;  %v459_v54 = vcombine.high %v402_v35, %v418_v41  ;;  %v635_v56 = vcombine.high %v313_v42, %v1534_v48  ;;  %273 = vst.msk [vmem:[%s262_s20] sm:$0xff] %vm272_vm12, %v1408_v31 }
  0x90   : > { %v1624_v59 = vrot.slane %v594_v47, %v1569_v16  ;;  %v610_v61 = vcombine.low %v545_v24, %v561_v40  ;;  %v611_v63 = vcombine.high %v545_v24, %v561_v40  ;;  %v474_v5 = vcombine.low %v409_v38, %v425_v46  ;;  %275 = vst.msk [vmem:[%s267_s22] sm:$0xff] %vm272_vm12, %v1408_v31 }
  0x91   : > { %v358_v1 = vpop.permute.xlu1 %357  ;;  %v1627_v3 = vrot.slane %v458_v53, %v1569_v16  ;;  %v473_v58 = vrot.slane %v459_v54, %v1569_v16  ;;  %v475_v6 = vcombine.high %v409_v38, %v425_v46  ;;  %v658_v48 = vrot.slane %v650_v49, %v1480_v7  ;;  %276 = vst.msk [vmem:[%s267_s22 + $0x8] sm:$0xff] %vm272_vm12, %v1408_v31 }
  0x92   : > { %v354_v2 = vpop.permute.xlu0 %353  ;;  %v626_v8 = vcombine.low %v1608_v43, %v1624_v59  ;;  %v1634_v9 = vrot.slane %v651_v50, %v1480_v7  ;;  %v642_v10 = vrot.slane %v634_v51, %v1480_v7  ;;  %v1638_v11 = vrot.slane %v635_v56, %v1480_v7 }
  0x93   : > { %v770_v13 = vcombine.low %v354_v2, %v358_v1  ;;  %v771_v14 = vcombine.high %v354_v2, %v358_v1  ;;  %v491_v17 = vcombine.high %v1581_v19, %v1627_v3  ;;  %v609_v21 = vrot.slane %v595_v57, %v1569_v16 }
  0x94   : > { %v699_v22 = vcombine.high %v642_v10, %v658_v48  ;;  %v627_v23 = vcombine.high %v1608_v43, %v1624_v59  ;;  %v490_v24 = vcombine.low %v1581_v19, %v1627_v3  ;;  %v618_v25 = vrot.slane %v610_v61, %v1569_v16 }
  0x95   : > { %v625_v12 = vrot.slane %v611_v63, %v1569_v16  ;;  %v482_v15 = vrot.slane %v474_v5, %v1569_v16  ;;  %v489_v26 = vrot.slane %v475_v6, %v1569_v16  ;;  %v698_v27 = vcombine.low %v642_v10, %v658_v48 }
  0x96   : > { %v356_v18 = vpop.permute.xlu0 %355  ;;  %v778_v30 = vrot.slane %v770_v13, %v1480_v7  ;;  %v714_v33 = vcombine.low %v1638_v11, %v1634_v9  ;;  %v785_v35 = vrot.slane %v771_v14, %v1480_v7  ;;  %v1306_v38 = vpack.i.bf16 %v627_v23, %v491_v17 }
  0x97   : > { %v786_v20 = vcombine.high %v356_v18, %v1408_v31  ;;  %v793_v32 = vrot.slane %v356_v18, %v1480_v7  ;;  %v492_v39 = vcombine.low %v1584_v4, %v473_v58  ;;  %v713_v40 = vrot.slane %v699_v22, %v1569_v16 }
  0x98   : > { %v628_v42 = vcombine.low %v1611_v44, %v609_v21  ;;  %1307 = vrot.lane.b32.xlu1 %v1306_v38, %s1409_s28  ;;  %v493_v46 = vcombine.high %v1584_v4, %v473_v58  ;;  %v629_v47 = vcombine.high %v1611_v44, %v609_v21  ;;  %v494_v49 = vcombine.low %v1587_v28, %v482_v15 }
  0x99   : > { %v800_v41 = vrot.slane %v786_v20, %v1480_v7  ;;  %v802_v34 = vcombine.high %v778_v30, %v793_v32  ;;  %v630_v50 = vcombine.low %v1620_v52, %v618_v25  ;;  %v593_v51 = vrot.slane %v579_v45, %v1569_v16 }
  0x9a   : > { %v801_v53 = vcombine.low %v778_v30, %v793_v32  ;;  %v1311_v56 = vpack.i.bf16 %v628_v42, %v492_v39  ;;  %v1316_v57 = vpack.i.bf16 %v629_v47, %v493_v46  ;;  %v495_v63 = vcombine.high %v1587_v28, %v482_v15 }
  0x9b   : > { %v816_v54 = vrot.slane %v802_v34, %v1569_v16  ;;  %v817_v7 = vcombine.low %v785_v35, %v800_v41  ;;  %v1321_v61 = vpack.i.bf16 %v630_v50, %v494_v49  ;;  %v1670_v1 = vrot.slane %v698_v27, %v1569_v16 }
  0x9c   : > { %v631_v4 = vcombine.high %v1620_v52, %v618_v25  ;;  %v764_v44 = vcombine.low %v713_v40, %v1598_v36  ;;  %v496_v2 = vcombine.low %v1590_v29, %v489_v26  ;;  %v722_v45 = vrot.slane %v714_v33, %v1569_v16  ;;  %1312 = vrot.lane.b32.xlu0 %v1311_v56, %s1410_s29 }
  0x9d   : > { %1317 = vrot.lane.b32.xlu1 %v1316_v57, %s1411_s30  ;;  %v632_v58 = vcombine.low %v593_v51, %v625_v12  ;;  %v754_v28 = vrot.slane %v746_v62, %v1569_v16  ;;  %v497_v52 = vcombine.high %v1590_v29, %v489_v26  ;;  %v633_v48 = vcombine.high %v593_v51, %v625_v12 }
  0x9e   : > { %v1326_v5 = vpack.i.bf16 %v631_v4, %v495_v63  ;;  %v1341_v6 = vpack.i.bf16 %v816_v54, %v764_v44  ;;  %v1683_v10 = vrot.slane %v801_v53, %v1569_v16  ;;  %v825_v14 = vrot.slane %v817_v7, %v1569_v16 }
  0x9f   : > { %v1331_v13 = vpack.i.bf16 %v632_v58, %v496_v2  ;;  %v1336_v17 = vpack.i.bf16 %v633_v48, %v497_v52  ;;  %v762_v21 = vcombine.low %v1670_v1, %v1601_v37  ;;  %v766_v22 = vcombine.low %v722_v45, %v754_v28 }
  0xa0   : > { %1322 = vrot.lane.b32.xlu0 %v1321_v61, %s1412_s5  ;;  %v833_v18 = vcombine.high %v1683_v10, %v1408_v31  ;;  %v715_v29 = vcombine.high %v1638_v11, %v1634_v9  ;;  %v763_v23 = vcombine.high %v1670_v1, %v1601_v37  ;;  %v818_v25 = vcombine.high %v785_v35, %v800_v41 }
  0xa1   : > { %1342 = vrot.lane.b32.xlu1 %v1341_v6, %s1410_s29  ;;  %v1346_v62 = vpack.i.bf16 %v825_v14, %v766_v22  ;;  %v834_v15 = vcombine.high %v816_v54, %v1408_v31  ;;  %v765_v27 = vcombine.high %v713_v40, %v1598_v36  ;;  %v761_v9 = vrot.slane %v747_v0, %v1569_v16  ;;  %v984_v36 = vld [vmem:[%s1782_s2] sm:$0xff] }
  0xa2   : > { %v1351_v12 = vpack.i.bf16 %v833_v18, %v763_v23  ;;  %v729_v26 = vrot.slane %v715_v29, %v1569_v16  ;;  %v832_v11 = vrot.slane %v818_v25, %v1569_v16  ;;  %v835_v30 = vcombine.high %v825_v14, %v1408_v31  ;;  %1255 = vmatprep.mubr.msk.f32.mxu0 %vm986_vm1, %v984_v36 }
  0xa3   : > { %v1356_v20 = vpack.i.bf16 %v834_v15, %v765_v27  ;;  %v767_v32 = vcombine.high %v722_v45, %v754_v28 }
  0xa4   : > { %1327 = vrot.lane.b32.xlu0 %v1326_v5, %s1413_s6  ;;  %v768_v33 = vcombine.low %v729_v26, %v761_v9  ;;  %v836_v55 = vcombine.high %v832_v11, %v1408_v31  ;;  %v769_v0 = vcombine.high %v729_v26, %v761_v9 }
  0xa5   : > { %1347 = vrot.lane.b32.xlu1 %v1346_v62, %s1412_s5  ;;  %v1366_v35 = vpack.i.bf16 %v835_v30, %v767_v32 }
  0xa6   : > { %v1361_v60 = vpack.i.bf16 %v832_v11, %v768_v33  ;;  %v1371_v16 = vpack.i.bf16 %v836_v55, %v769_v0 }
  0xa8   : > { %1332 = vrot.lane.b32.xlu0 %v1331_v13, %s1414_s7 }
  0xa9   : > { %1352 = vrot.lane.b32.xlu1 %v1351_v12, %s1409_s28 }
  0xac   : > { %1337 = vrot.lane.b32.xlu0 %v1336_v17, %s1415_s8 }
  0xad   : > { %1357 = vrot.lane.b32.xlu1 %v1356_v20, %s1411_s30 }
  0xb0   : > { %1367 = vrot.lane.b32.xlu0 %v1366_v35, %s1413_s6 }
  0xb1   : > { %1362 = vrot.lane.b32.xlu1 %v1361_v60, %s1414_s7 }
  0xb4   : > { %1372 = vrot.lane.b32.xlu0 %v1371_v16, %s1415_s8 }
 0x10a   : > { %v1308_v38 = vpop.permute.xlu1 %1307 }
 0x10b   : > { %v1310_v41 = vunpack.i.h.bf16 %v1308_v38  ;;  %v1309_v34 = vunpack.i.l.bf16 %v1308_v38 }
 0x10d   : > { %v951_v50 = vsel %vm949_vm2, %v626_v8, %v1310_v41  ;;  %v950_v51 = vsel %vm949_vm2, %v490_v24, %v1309_v34 }
 0x10e   : > { %v1313_v39 = vpop.permute.xlu0 %1312 }
 0x10f   : > { %v1318_v40 = vpop.permute.xlu1 %1317  ;;  %v1315_v47 = vunpack.i.h.bf16 %v1313_v39  ;;  %v1314_v49 = vunpack.i.l.bf16 %v1313_v39 }
 0x110   : > { %v1320_v53 = vunpack.i.h.bf16 %v1318_v40  ;;  %v1319_v54 = vunpack.i.l.bf16 %v1318_v40 }
 0x111   : > { %v956_v57 = vsel %vm954_vm3, %v951_v50, %v1315_v47  ;;  %v955_v61 = vsel %vm954_vm3, %v950_v51, %v1314_v49  ;;  %v985_v50 = vld [vmem:[%s1782_s2 + $0x8] sm:$0xff] }
 0x112   : > { %v1323_v42 = vpop.permute.xlu0 %1322  ;;  %v960_v59 = vsel %vm959_vm4, %v955_v61, %v1319_v54  ;;  %v961_v8 = vsel %vm959_vm4, %v956_v57, %v1320_v53 }
 0x113   : > { %v1343_v46 = vpop.permute.xlu1 %1342  ;;  %v1325_v63 = vunpack.i.h.bf16 %v1323_v42  ;;  %v1324_v43 = vunpack.i.l.bf16 %v1323_v42 }
 0x114   : > { %v1345_v45 = vunpack.i.h.bf16 %v1343_v46  ;;  %v1344_v58 = vunpack.i.l.bf16 %v1343_v46 }
 0x115   : > { %v965_v6 = vsel %vm964_vm5, %v960_v59, %v1324_v43  ;;  %v966_v52 = vsel %vm964_vm5, %v961_v8, %v1325_v63  ;;  %v1073_v43 = vld [vmem:[%s262_s20 + $0x8] sm:$0xff]  ;;  %v1072_v59 = vld [vmem:[%s262_s20] sm:$0xff] }
 0x116   : > { %v1328_v7 = vpop.permute.xlu0 %1327 }
 0x117   : > { %v1348_v56 = vpop.permute.xlu1 %1347  ;;  %v1330_v19 = vunpack.i.h.bf16 %v1328_v7  ;;  %v1329_v3 = vunpack.i.l.bf16 %v1328_v7 }
 0x118   : > { %v1350_v22 = vunpack.i.h.bf16 %v1348_v56  ;;  %v1349_v62 = vunpack.i.l.bf16 %v1348_v56 }
 0x119   : > { %v970_v14 = vsel %vm969_vm6, %v965_v6, %v1329_v3  ;;  %v971_v17 = vsel %vm969_vm6, %v966_v52, %v1330_v19 }
 0x11a   : > { %v1333_v24 = vpop.permute.xlu0 %1332 }
 0x11b   : > { %v1353_v4 = vpop.permute.xlu1 %1352  ;;  %v1335_v28 = vunpack.i.h.bf16 %v1333_v24  ;;  %v1334_v5 = vunpack.i.l.bf16 %v1333_v24 }
 0x11c   : > { %v1355_v44 = vunpack.i.h.bf16 %v1353_v4  ;;  %v1354_v2 = vunpack.i.l.bf16 %v1353_v4  ;;  %v1086_v4 = vld [vmem:[%s267_s22] sm:$0xff] }
 0x11d   : > { %v975_v37 = vsel %vm974_vm7, %v970_v14, %v1334_v5  ;;  %v976_v1 = vsel %vm974_vm7, %v971_v17, %v1335_v28 }
 0x11e   : > { %v953_v48 = vsel %vm949_vm2, %v1683_v10, %v1355_v44  ;;  %v952_v13 = vsel %vm949_vm2, %v762_v21, %v1354_v2  ;;  %v1338_v18 = vpop.permute.xlu0 %1337  ;;  %v1087_v44 = vld [vmem:[%s267_s22 + $0x8] sm:$0xff] }
 0x11f   : > { %v1358_v29 = vpop.permute.xlu1 %1357  ;;  %v1340_v23 = vunpack.i.h.bf16 %v1338_v18  ;;  %v1339_v25 = vunpack.i.l.bf16 %v1338_v18  ;;  %v957_v26 = vsel %vm954_vm3, %v952_v13, %v1344_v58  ;;  %v958_v10 = vsel %vm954_vm3, %v953_v48, %v1345_v45 }
 0x120   : > { %v1360_v12 = vunpack.i.h.bf16 %v1358_v29  ;;  %v1359_v15 = vunpack.i.l.bf16 %v1358_v29 }
 0x121   : > { %v980_v9 = vsel %vm979_vm8, %v975_v37, %v1339_v25  ;;  %v981_v11 = vsel %vm979_vm8, %v976_v1, %v1340_v23 }
 0x122   : > { %v962_v21 = vsel %vm959_vm4, %v957_v26, %v1359_v15  ;;  %v963_v27 = vsel %vm959_vm4, %v958_v10, %v1360_v12  ;;  %v1368_v30 = vpop.permute.xlu0 %1367  ;;  %v1258_v33 = vpack.c.bf16 %v981_v11, %v980_v9 }
 0x123   : > { %v967_v20 = vsel %vm964_vm5, %v962_v21, %v1349_v62  ;;  %v968_v32 = vsel %vm964_vm5, %v963_v27, %v1350_v22  ;;  %v1363_v36 = vpop.permute.xlu1 %1362  ;;  %v1370_v35 = vunpack.i.h.bf16 %v1368_v30  ;;  %v1369_v55 = vunpack.i.l.bf16 %v1368_v30 }
 0x124   : > { %v1365_v60 = vunpack.i.h.bf16 %v1363_v36  ;;  %v1364_v0 = vunpack.i.l.bf16 %v1363_v36  ;;  %1259 = vmatprep.subr.bf16.mxu0 %v1258_v33 }
 0x125   : > { %1261 = vmatpush3.bf16.msra.mxu0 %v1258_v33  ;;  %v972_v16 = vsel %vm969_vm6, %v967_v20, %v1369_v55  ;;  %v973_v38 = vsel %vm969_vm6, %v968_v32, %v1370_v35 }
 0x126   : > { %v1373_v39 = vpop.permute.xlu0 %1372  ;;  %v977_v40 = vsel %vm974_vm7, %v972_v16, %v1364_v0  ;;  %v978_v41 = vsel %vm974_vm7, %v973_v38, %v1365_v60 }
 0x127   : > { %v1375_v34 = vunpack.i.h.bf16 %v1373_v39  ;;  %v1374_v42 = vunpack.i.l.bf16 %v1373_v39 }
 0x129   : > { %v982_v46 = vsel %vm979_vm8, %v977_v40, %v1374_v42  ;;  %v983_v47 = vsel %vm979_vm8, %v978_v41, %v1375_v34 }
 0x12a   : > { %v1262_v49 = vpack.c.bf16 %v983_v47, %v982_v46 }
 0x12c   : > { %1264 = vmatprep.subr.msk.bf16.mxu0 %vm1263_vm11, %v1262_v49 }
 0x12d   : > { %1267 = vmatpush3.bf16.msk.msra.mxu0 %vm1263_vm11, %v1262_v49 }
 0x130   : > { %1256 = vmatmul.mubr.msk.f32.vlgmr.msra.gmra.mrb[0].mxu0 %vm986_vm1, %v985_v50 }
 0x203   : > { %v1257_v51 = vpop.f32.mrb[0].mxu0 }
 0x204   : > { %v1063_v53 = vpop.f32.mrb[1].mxu0  ;;  %v1078_v54 = vsel %vm1074_vm13, %v1257_v51, 0.0  ;;  %v1089_v7 = vmul.f32 %v1257_v51, %v1257_v51 }
 0x205   : > { %v1088_v56 = vmul.f32 %v1063_v53, %v1063_v53  ;;  %1079 = vadd.xlane.f32.xlu0 %v1078_v54  ;;  %v1075_v57 = vsel %vm1074_vm13, %v1063_v53, 0.0 }
 0x206   : > { %1076 = vadd.xlane.f32.xlu1 %v1075_v57  ;;  %v1093_v63 = vsel %vm1074_vm13, %v1089_v7, 0.0 }
 0x207   : > { %v1090_v61 = vsel %vm1074_vm13, %v1088_v56, 0.0 }
 0x209   : > { %1091 = vadd.xlane.f32.xlu0 %v1090_v61 }
 0x20a   : > { %1094 = vadd.xlane.f32.xlu1 %v1093_v63 }
 0x292   : > { %v1080_v8 = vpop.xlane.xlu0 %1079 }
 0x293   : > { %v1082_v19 = vadd.f32 %v1080_v8, %v1073_v43  ;;  %v1077_v3 = vpop.xlane.xlu1 %1076 }
 0x294   : > { %v1081_v24 = vadd.f32 %v1077_v3, %v1072_v59 }
 0x295   : > { %1085 = vst.msk [vmem:[%s262_s20 + $0x8] sm:$0xff] %vm272_vm12, %v1082_v19 }
 0x296   : > { %1084 = vst.msk [vmem:[%s262_s20] sm:$0xff] %vm272_vm12, %v1081_v24  ;;  %v1092_v2 = vpop.xlane.xlu0 %1091 }
 0x297   : > { %v1096_v45 = vadd.f32 %v1092_v2, %v1086_v4  ;;  %v1095_v58 = vpop.xlane.xlu1 %1094 }
 0x298   : > { %v1097_v28 = vadd.f32 %v1095_v58, %v1087_v44 }
 0x299   : > { %1098 = vst.msk [vmem:[%s267_s22] sm:$0xff] %vm272_vm12, %v1096_v45 }
 0x29a   : > { %1099 = vst.msk [vmem:[%s267_s22 + $0x8] sm:$0xff] %vm272_vm12, %v1097_v28 }
 0x29b PF: > { %s15_s17 = sadd.s32 1, %s1403_s17   ;;  %s1785_s15 = smov %s1399_s16 }
 0x29c   : > { %p12_p5 = scmp.ge.s32.totalorder %s15_s17, 4   ;;  %s1786_s16 = smov %s1788_s18 }
 0x29e   :  { %14 = sbr.rel (!%p12_p5) target bundleno = 2 (0x2), region = 81 }

</bundles_post_ra>
